<compile_context>
chip_gen: v6e
topology: v6e:2x2x1
jax: 0.10.0
libtpu: 0.0.40
codegen_flags: <defaults>
</compile_context>

<pallas_src>
import jax
import jax.numpy as jnp
from jax.experimental import pallas as pl
from jax.experimental.pallas import tpu as pltpu


def _round_up(n, m):
    return (n + m - 1) // m * m


def _sa_flash_kernel(xqa_ref, xres_ref, kk_ref, v_ref, bv_ref, gamma_ref, o_ref,
                     m_scr, l_scr, acc_scr):
    """Grid = (B, N/TQ, N/TK); online-softmax accumulation over the key axis."""
    ki = pl.program_id(2)

    # --- init per (batch, query-tile) ----------------------------------------
    @pl.when(ki == 0)
    def _init():
        m_scr[...] = jnp.full_like(m_scr, -1e30)
        l_scr[...] = jnp.zeros_like(l_scr)
        acc_scr[...] = jnp.zeros_like(acc_scr)

    # Logits tile in (key, query) orientation: (TK, Ca) @ (Ca, TQ) -> (TK, TQ).
    # Padded key rows carry a -1e9 bias baked into the augmented bias channel,
    # so exp(s - m) underflows to exactly 0 for them -- no in-kernel mask.
    # (A fully-masked key tile cannot occur: padding < 128 <= TK.)
    s = jnp.dot(kk_ref[0], xqa_ref[0], preferred_element_type=jnp.float32)

    m_prev = m_scr[...]                                           # (1, TQ)
    m_new = jnp.maximum(m_prev, jnp.max(s, axis=0, keepdims=True))
    alpha = jnp.exp(m_prev - m_new)                               # (1, TQ)
    p = jnp.exp(s - m_new)                                        # (TK, TQ) unnormalized
    l_scr[...] = alpha * l_scr[...] + jnp.sum(p, axis=0, keepdims=True)
    # (C, TK) @ (TK, TQ) -> (C, TQ): natural matmul, accumulator stays (C, TQ)
    # so the alpha rescale is a lane-dense sublane broadcast.
    acc_scr[...] = alpha * acc_scr[...] + jnp.dot(
        v_ref[0], p.astype(jnp.bfloat16), preferred_element_type=jnp.float32)
    m_scr[...] = m_new

    # --- finalize: deferred normalization, bias, gamma, residual --------------
    @pl.when(ki == pl.num_programs(2) - 1)
    def _finalize():
        inv_l = pl.reciprocal(l_scr[...], approx=False)           # exact, once/tile
        out = acc_scr[...] * inv_l + bv_ref[...]                  # softmax sums to 1 => +bv
        o_ref[0] = gamma_ref[0, 0] * out + xres_ref[0]            # (C, TQ) lane-dense


def self_attention_pallas(x_nchw, wq, bq, wk, bk, wv, bv, gamma, *, tq=None, tk=None):
    """SAGAN self-attention forward.

    x_nchw: (B, C, H, W) f32.  wq/wk: (C//8, C), wv: (C, C) 1x1-conv weights,
    bq/bk: (C//8,), bv: (C,), gamma: (1,).  Returns (B, C, H, W) f32.
    """
    del bk  # key bias is constant per query row -> cancels exactly in the softmax
    B, C, H, W = x_nchw.shape
    N = H * W
    Npad = _round_up(N, 128)

    if tq is None:
        tq = next(c for c in (512, 256, 128) if Npad % c == 0)
        # v7x has 2 TensorCores: keep >= 2 parallel (batch, query-tile) units.
        while B * (Npad // tq) < 2 and tq > 128:
            tq //= 2
    if tk is None:
        tk = next(c for c in (1024, 512, 256, 128) if Npad % c == 0)
    tq = min(tq, Npad)
    tk = min(tk, Npad)
    assert Npad % tq == 0 and Npad % tk == 0, (Npad, tq, tk)
    nq, nk = Npad // tq, Npad // tk

    f32 = jnp.float32
    x = x_nchw.reshape(B, C, N).astype(f32)
    if Npad != N:
        x = jnp.pad(x, ((0, 0), (0, 0), (0, Npad - N)))

    # ---- one-time XLA precompute (hoisted out of the flash loop) -------------
    Ca = _round_up(C + 1, 8)                        # C channels + 1 bias channel
    A = wq.astype(f32).T @ wk.astype(f32)           # (C, C) = Wq^T Wk
    kk = jnp.einsum('de,ben->bdn', A, x)            # (B, C, Npad) fused keys
    cvec = bq.astype(f32) @ wk.astype(f32)          # (C,)   = Wk^T bq
    c = jnp.einsum('e,ben->bn', cvec, x)            # (B, Npad) per-key logit bias
    if Npad != N:
        c = jnp.where(jnp.arange(Npad)[None, :] < N, c, -1e9)   # mask padded keys
    kk_aug = jnp.concatenate(
        [jnp.swapaxes(kk, 1, 2), c[:, :, None],
         jnp.zeros((B, Npad, Ca - C - 1), f32)], axis=-1).astype(jnp.bfloat16)
    xq_aug = jnp.concatenate(
        [x, jnp.ones((B, 1, Npad), f32),
         jnp.zeros((B, Ca - C - 1, Npad), f32)], axis=1).astype(jnp.bfloat16)
    v = jnp.einsum('oe,ben->bon', wv.astype(f32), x).astype(jnp.bfloat16)
    bv2 = bv.reshape(C, 1).astype(f32)
    gamma2 = gamma.reshape(1, 1).astype(f32)

    # ---- VMEM / cost bookkeeping ---------------------------------------------
    def tile_bytes(rows, cols, itemsize, row_align):
        return _round_up(rows, row_align) * _round_up(cols, 128) * itemsize

    vmem_est = (2 * tile_bytes(Ca, tq, 2, 16)       # xq_aug block (double-buffered)
                + 2 * tile_bytes(C, tq, 4, 8)       # f32 residual block
                + 2 * tile_bytes(tk, Ca, 2, 16)     # kk_aug key tile
                + 2 * tile_bytes(C, tk, 2, 16)      # v key tile
                + 2 * tile_bytes(C, tq, 4, 8)       # output block
                + 2 * tile_bytes(C, 1, 4, 8)        # bv
                + tile_bytes(C, tq, 4, 8)           # acc scratch
                + 2 * tile_bytes(1, tq, 4, 8))      # m, l scratch
    assert vmem_est < 28 * 1024 * 1024, vmem_est    # fits v5e/v6e/v7x scoped VMEM

    cost = pl.CostEstimate(
        flops=int(2 * B * Npad * Npad * (Ca + C)),
        transcendentals=int(B * Npad * Npad),
        bytes_accessed=int(B * nq * tq * (2 * Ca + 8 * C)
                           + B * nq * nk * tk * 2 * (Ca + C)))

    out = pl.pallas_call(
        _sa_flash_kernel,
        out_shape=jax.ShapeDtypeStruct((B, C, Npad), f32),
        grid_spec=pltpu.PrefetchScalarGridSpec(
            num_scalar_prefetch=0,
            grid=(B, nq, nk),
            in_specs=[
                pl.BlockSpec((1, Ca, tq), lambda b, qi, ki: (b, 0, qi)),  # aug. queries (bf16, resident over ki)
                pl.BlockSpec((1, C, tq), lambda b, qi, ki: (b, 0, qi)),   # residual x (f32)
                pl.BlockSpec((1, tk, Ca), lambda b, qi, ki: (b, ki, 0)),  # fused keys + logit bias (bf16)
                pl.BlockSpec((1, C, tk), lambda b, qi, ki: (b, 0, ki)),   # values (bf16)
                pl.BlockSpec((C, 1), lambda b, qi, ki: (0, 0)),           # bv
                pl.BlockSpec((1, 1), lambda b, qi, ki: (0, 0),
                             memory_space=pltpu.MemorySpace.SMEM),        # gamma scalar
            ],
            out_specs=pl.BlockSpec((1, C, tq), lambda b, qi, ki: (b, 0, qi)),
            scratch_shapes=[
                pltpu.VMEM((1, tq), jnp.float32),   # running max m
                pltpu.VMEM((1, tq), jnp.float32),   # running sum l
                pltpu.VMEM((C, tq), jnp.float32),   # output accumulator (C, TQ)
            ]),
        compiler_params=pltpu.CompilerParams(
            dimension_semantics=("parallel", "parallel", "arbitrary"),
            vmem_limit_bytes=32 * 1024 * 1024),
        cost_estimate=cost,
    )(xq_aug, x, kk_aug, v, bv2, gamma2)

    if Npad != N:
        out = out[:, :, :N]
    return out.reshape(B, C, H, W)


def self_attention_ref(x_nchw, wq, bq, wk, bk, wv, bv, gamma):
    """Pure-JAX reference mirroring the PyTorch forward exactly (f32)."""
    B, C, H, W = x_nchw.shape
    N = H * W
    x = x_nchw.reshape(B, C, N)
    q = jnp.einsum('oc,bcn->bon', wq, x) + bq[None, :, None]   # (B, C8, N)
    k = jnp.einsum('oc,bcn->bon', wk, x) + bk[None, :, None]   # (B, C8, N)
    v = jnp.einsum('oc,bcn->bon', wv, x) + bv[None, :, None]   # (B, C,  N)
    attn = jax.nn.softmax(jnp.einsum('bci,bcj->bij', q, k), axis=-1)
    out = jnp.einsum('bcj,bij->bci', v, attn)                  # (B, C, N)
    return (gamma[0] * out + x).reshape(B, C, H, W)


if __name__ == "__main__":
    B, C = 2, 32
    C8 = C // 8

    key = jax.random.PRNGKey(0)
    kx1, kwq, kbq, kwk, kbk, kwv, kbv, kx3 = jax.random.split(key, 8)

    # Conv2d 1x1 weights as (Cout, Cin) matrices.
    wq = jax.random.normal(kwq, (C8, C), jnp.float32) * 0.1
    bq = jax.random.normal(kbq, (C8,), jnp.float32) * 0.1
    wk = jax.random.normal(kwk, (C8, C), jnp.float32) * 0.1
    bk = jax.random.normal(kbk, (C8,), jnp.float32) * 0.1
    wv = jax.random.normal(kwv, (C, C), jnp.float32) * 0.1
    bv = jax.random.normal(kbv, (C,), jnp.float32) * 0.1
    # gamma is zero-init in the module; use a nonzero value so the attention
    # path is actually exercised.
    gamma = jnp.array([0.5], jnp.float32)

    fn = jax.jit(self_attention_pallas, static_argnames=("tq", "tk"))
    TOL = dict(atol=2e-2, rtol=2e-2)  # bf16 MXU operands, f32 accumulation

    # Test 1: 16x16 map (N=256), auto tiles (single key step per query tile).
    x1 = jax.random.normal(kx1, (B, C, 16, 16), jnp.float32)
    y1 = jax.block_until_ready(fn(x1, wq, bq, wk, bk, wv, bv, gamma))
    r1 = self_attention_ref(x1, wq, bq, wk, bk, wv, bv, gamma)
    assert y1.shape == x1.shape
    assert jnp.allclose(y1, r1, **TOL), "mismatch vs reference (auto tiles)"

    # Test 2: same inputs, forced 128x128 tiles -> multi-step online softmax.
    y2 = jax.block_until_ready(fn(x1, wq, bq, wk, bk, wv, bv, gamma, tq=128, tk=128))
    assert jnp.allclose(y2, r1, **TOL), "mismatch vs reference (tiled online softmax)"

    # Test 3: 12x12 map (N=144 -> padded to 256) -> exercises padded-key handling.
    x3 = jax.random.normal(kx3, (B, C, 12, 12), jnp.float32)
    y3 = jax.block_until_ready(fn(x3, wq, bq, wk, bk, wv, bv, gamma, tq=128, tk=128))
    r3 = self_attention_ref(x3, wq, bq, wk, bk, wv, bv, gamma)
    assert y3.shape == x3.shape
    assert jnp.allclose(y3, r3, **TOL), "mismatch vs reference (padded/masked N)"

    print("KERNEL_OK")
</pallas_src>

<mosaic_0001>
module attributes {stable_mosaic.version = 11 : i64} {
  func.func @_sa_flash_kernel(%arg0: i32, %arg1: i32, %arg2: i32, %arg3: memref<1x40x256xbf16, #tpu.memory_space<vmem>>, %arg4: memref<1x32x256xf32, #tpu.memory_space<vmem>>, %arg5: memref<1x256x40xbf16, #tpu.memory_space<vmem>>, %arg6: memref<1x32x256xbf16, #tpu.memory_space<vmem>>, %arg7: memref<32x1xf32, #tpu.memory_space<vmem>>, %arg8: memref<1x1xf32, #tpu.memory_space<smem>>, %arg9: memref<1x32x256xf32, #tpu.memory_space<vmem>>, %arg10: memref<1x256xf32, #tpu.memory_space<vmem>>, %arg11: memref<1x256xf32, #tpu.memory_space<vmem>>, %arg12: memref<32x256xf32, #tpu.memory_space<vmem>>) attributes {dimension_semantics = [#tpu.dimension_semantics<parallel>, #tpu.dimension_semantics<parallel>, #tpu.dimension_semantics<arbitrary>], iteration_bounds = array<i64: 2, 1, 1>, scalar_prefetch = 0 : i64, scratch_operands = 3 : i64, tpu.core_type = #tpu.core_type<tc>, window_params = [{transform_indices = @transform_0, window_bounds = array<i64: 1, 40, 256>}, {transform_indices = @transform_1, window_bounds = array<i64: 1, 32, 256>}, {transform_indices = @transform_2, window_bounds = array<i64: 1, 256, 40>}, {transform_indices = @transform_3, window_bounds = array<i64: 1, 32, 256>}, {pipeline_mode = #tpu.pipeline_mode<synchronous>, transform_indices = @transform_4, window_bounds = array<i64: 32, 1>}, {transform_indices = @transform_5, window_bounds = array<i64: 1, 1>}, {transform_indices = @transform_6, window_bounds = array<i64: 1, 32, 256>}]} {
    %c0_i32 = arith.constant 0 : i32
    %0 = arith.cmpi eq, %arg2, %c0_i32 : i32
    %1 = arith.extui %0 : i1 to i32
    %c0_i32_0 = arith.constant 0 : i32
    %2 = arith.cmpi ne, %1, %c0_i32_0 : i32
    scf.if %2 {
      %cst_26 = arith.constant -1.000000e+30 : f32
      %36 = vector.broadcast %cst_26 : f32 to vector<1x256xf32>
      %c0_27 = arith.constant 0 : index
      %c0_28 = arith.constant 0 : index
      %37 = vector.load %arg10[%c0_27, %c0_28] : memref<1x256xf32, #tpu.memory_space<vmem>>, vector<1x256xf32>
      tpu.vector_store %arg10[%c0_27, %c0_28], %36 {strides = array<i32>} : memref<1x256xf32, #tpu.memory_space<vmem>>, vector<1x256xf32>,
      %cst_29 = arith.constant 0.000000e+00 : f32
      %38 = vector.broadcast %cst_29 : f32 to vector<1x256xf32>
      %c0_30 = arith.constant 0 : index
      %c0_31 = arith.constant 0 : index
      %39 = vector.load %arg11[%c0_30, %c0_31] : memref<1x256xf32, #tpu.memory_space<vmem>>, vector<1x256xf32>
      tpu.vector_store %arg11[%c0_30, %c0_31], %38 {strides = array<i32>} : memref<1x256xf32, #tpu.memory_space<vmem>>, vector<1x256xf32>,
      %cst_32 = arith.constant 0.000000e+00 : f32
      %40 = vector.broadcast %cst_32 : f32 to vector<32x256xf32>
      %c0_33 = arith.constant 0 : index
      %c0_34 = arith.constant 0 : index
      %41 = vector.load %arg12[%c0_33, %c0_34] : memref<32x256xf32, #tpu.memory_space<vmem>>, vector<32x256xf32>
      tpu.vector_store %arg12[%c0_33, %c0_34], %40 {strides = array<i32>} : memref<32x256xf32, #tpu.memory_space<vmem>>, vector<32x256xf32>,
    } else {
    }
    %c0 = arith.constant 0 : index
    %c0_1 = arith.constant 0 : index
    %c0_2 = arith.constant 0 : index
    %3 = vector.load %arg5[%c0, %c0_1, %c0_2] : memref<1x256x40xbf16, #tpu.memory_space<vmem>>, vector<1x256x40xbf16>
    %4 = vector.shape_cast %3 : vector<1x256x40xbf16> to vector<256x40xbf16>
    %c0_3 = arith.constant 0 : index
    %c0_4 = arith.constant 0 : index
    %c0_5 = arith.constant 0 : index
    %5 = vector.load %arg3[%c0_3, %c0_4, %c0_5] : memref<1x40x256xbf16, #tpu.memory_space<vmem>>, vector<1x40x256xbf16>
    %6 = vector.shape_cast %5 : vector<1x40x256xbf16> to vector<40x256xbf16>
    %cst = arith.constant dense<0.000000e+00> : vector<256x256xf32>
    %7 = tpu.matmul %4, %6, %cst {dimension_numbers = #tpu.dot_dimension_numbers<[1], [0], [0], [1], [0, 0, 1, 1], [], []>} : vector<256x40xbf16>, vector<40x256xbf16>, vector<256x256xf32> -> vector<256x256xf32>
    %c0_6 = arith.constant 0 : index
    %c0_7 = arith.constant 0 : index
    %8 = vector.load %arg10[%c0_6, %c0_7] : memref<1x256xf32, #tpu.memory_space<vmem>>, vector<1x256xf32>
    %cst_8 = arith.constant dense<0xFF800000> : vector<256xf32>
    %9 = vector.multi_reduction <maximumf>, %7, %cst_8 [0] : vector<256x256xf32> to vector<256xf32>
    %10 = vector.shape_cast %9 : vector<256xf32> to vector<1x256xf32>
    %11 = arith.maximumf %8, %10 : vector<1x256xf32>
    %12 = arith.subf %8, %11 : vector<1x256xf32>
    %13 = math.exp %12 : vector<1x256xf32>
    %14 = vector.broadcast %11 : vector<1x256xf32> to vector<256x256xf32>
    %15 = arith.subf %7, %14 : vector<256x256xf32>
    %16 = math.exp %15 : vector<256x256xf32>
    %c0_9 = arith.constant 0 : index
    %c0_10 = arith.constant 0 : index
    %17 = vector.load %arg11[%c0_9, %c0_10] : memref<1x256xf32, #tpu.memory_space<vmem>>, vector<1x256xf32>
    %18 = arith.mulf %13, %17 : vector<1x256xf32>
    %cst_11 = arith.constant dense<0.000000e+00> : vector<256xf32>
    %19 = vector.multi_reduction <add>, %16, %cst_11 [0] : vector<256x256xf32> to vector<256xf32>
    %20 = vector.shape_cast %19 : vector<256xf32> to vector<1x256xf32>
    %21 = arith.addf %18, %20 : vector<1x256xf32>
    %c0_12 = arith.constant 0 : index
    %c0_13 = arith.constant 0 : index
    %22 = vector.load %arg11[%c0_12, %c0_13] : memref<1x256xf32, #tpu.memory_space<vmem>>, vector<1x256xf32>
    tpu.vector_store %arg11[%c0_12, %c0_13], %21 {strides = array<i32>} : memref<1x256xf32, #tpu.memory_space<vmem>>, vector<1x256xf32>,
    %c0_14 = arith.constant 0 : index
    %c0_15 = arith.constant 0 : index
    %23 = vector.load %arg12[%c0_14, %c0_15] : memref<32x256xf32, #tpu.memory_space<vmem>>, vector<32x256xf32>
    %24 = vector.broadcast %13 : vector<1x256xf32> to vector<32x256xf32>
    %25 = arith.mulf %24, %23 : vector<32x256xf32>
    %c0_16 = arith.constant 0 : index
    %c0_17 = arith.constant 0 : index
    %c0_18 = arith.constant 0 : index
    %26 = vector.load %arg6[%c0_16, %c0_17, %c0_18] : memref<1x32x256xbf16, #tpu.memory_space<vmem>>, vector<1x32x256xbf16>
    %27 = vector.shape_cast %26 : vector<1x32x256xbf16> to vector<32x256xbf16>
    %28 = arith.truncf %16 : vector<256x256xf32> to vector<256x256xbf16>
    %cst_19 = arith.constant dense<0.000000e+00> : vector<32x256xf32>
    %29 = tpu.matmul %27, %28, %cst_19 {dimension_numbers = #tpu.dot_dimension_numbers<[1], [0], [0], [1], [0, 0, 1, 1], [], []>} : vector<32x256xbf16>, vector<256x256xbf16>, vector<32x256xf32> -> vector<32x256xf32>
    %30 = arith.addf %25, %29 : vector<32x256xf32>
    %c0_20 = arith.constant 0 : index
    %c0_21 = arith.constant 0 : index
    %31 = vector.load %arg12[%c0_20, %c0_21] : memref<32x256xf32, #tpu.memory_space<vmem>>, vector<32x256xf32>
    tpu.vector_store %arg12[%c0_20, %c0_21], %30 {strides = array<i32>} : memref<32x256xf32, #tpu.memory_space<vmem>>, vector<32x256xf32>,
    %c0_22 = arith.constant 0 : index
    %c0_23 = arith.constant 0 : index
    %32 = vector.load %arg10[%c0_22, %c0_23] : memref<1x256xf32, #tpu.memory_space<vmem>>, vector<1x256xf32>
    tpu.vector_store %arg10[%c0_22, %c0_23], %11 {strides = array<i32>} : memref<1x256xf32, #tpu.memory_space<vmem>>, vector<1x256xf32>,
    %c0_i32_24 = arith.constant 0 : i32
    %33 = arith.cmpi eq, %arg2, %c0_i32_24 : i32
    %34 = arith.extui %33 : i1 to i32
    %c0_i32_25 = arith.constant 0 : i32
    %35 = arith.cmpi ne, %34, %c0_i32_25 : i32
    scf.if %35 {
      %c0_26 = arith.constant 0 : index
      %c0_27 = arith.constant 0 : index
      %36 = vector.load %arg11[%c0_26, %c0_27] : memref<1x256xf32, #tpu.memory_space<vmem>>, vector<1x256xf32>
      %37 = tpu.reciprocal %36 : vector<1x256xf32> -> vector<1x256xf32>
      %c0_28 = arith.constant 0 : index
      %c0_29 = arith.constant 0 : index
      %38 = vector.load %arg12[%c0_28, %c0_29] : memref<32x256xf32, #tpu.memory_space<vmem>>, vector<32x256xf32>
      %39 = vector.broadcast %37 : vector<1x256xf32> to vector<32x256xf32>
      %40 = arith.mulf %38, %39 : vector<32x256xf32>
      %c0_30 = arith.constant 0 : index
      %c0_31 = arith.constant 0 : index
      %41 = vector.load %arg7[%c0_30, %c0_31] : memref<32x1xf32, #tpu.memory_space<vmem>>, vector<32x1xf32>
      %42 = vector.broadcast %41 : vector<32x1xf32> to vector<32x256xf32>
      %43 = arith.addf %40, %42 : vector<32x256xf32>
      %c0_32 = arith.constant 0 : index
      %c0_33 = arith.constant 0 : index
      %44 = memref.load %arg8[%c0_32, %c0_33] : memref<1x1xf32, #tpu.memory_space<smem>>
      %45 = vector.broadcast %44 : f32 to vector<32x256xf32>
      %46 = arith.mulf %45, %43 : vector<32x256xf32>
      %c0_34 = arith.constant 0 : index
      %c0_35 = arith.constant 0 : index
      %c0_36 = arith.constant 0 : index
      %47 = vector.load %arg4[%c0_34, %c0_35, %c0_36] : memref<1x32x256xf32, #tpu.memory_space<vmem>>, vector<1x32x256xf32>
      %48 = vector.shape_cast %47 : vector<1x32x256xf32> to vector<32x256xf32>
      %49 = arith.addf %46, %48 : vector<32x256xf32>
      %c0_37 = arith.constant 0 : index
      %c0_38 = arith.constant 0 : index
      %c0_39 = arith.constant 0 : index
      %50 = vector.load %arg9[%c0_37, %c0_38, %c0_39] : memref<1x32x256xf32, #tpu.memory_space<vmem>>, vector<1x32x256xf32>
      %51 = vector.shape_cast %50 : vector<1x32x256xf32> to vector<32x256xf32>
      %52 = vector.shape_cast %49 : vector<32x256xf32> to vector<1x32x256xf32>
      tpu.vector_store %arg9[%c0_37, %c0_38, %c0_39], %52 {strides = array<i32>} : memref<1x32x256xf32, #tpu.memory_space<vmem>>, vector<1x32x256xf32>,
    } else {
    }
    return
  }
  func.func @transform_0(%arg0: i32, %arg1: i32, %arg2: i32) -> (i32, i32, i32) {
    %c0_i32 = arith.constant 0 : i32
    %c0_i32_0 = arith.constant 0 : i32
    return %arg0, %c0_i32, %arg1 : i32, i32, i32
  }
  func.func @transform_1(%arg0: i32, %arg1: i32, %arg2: i32) -> (i32, i32, i32) {
    %c0_i32 = arith.constant 0 : i32
    %c0_i32_0 = arith.constant 0 : i32
    return %arg0, %c0_i32, %arg1 : i32, i32, i32
  }
  func.func @transform_2(%arg0: i32, %arg1: i32, %arg2: i32) -> (i32, i32, i32) {
    %c0_i32 = arith.constant 0 : i32
    %c0_i32_0 = arith.constant 0 : i32
    return %arg0, %arg2, %c0_i32 : i32, i32, i32
  }
  func.func @transform_3(%arg0: i32, %arg1: i32, %arg2: i32) -> (i32, i32, i32) {
    %c0_i32 = arith.constant 0 : i32
    %c0_i32_0 = arith.constant 0 : i32
    return %arg0, %c0_i32, %arg2 : i32, i32, i32
  }
  func.func @transform_4(%arg0: i32, %arg1: i32, %arg2: i32) -> (i32, i32) {
    %c0_i32 = arith.constant 0 : i32
    %c0_i32_0 = arith.constant 0 : i32
    %c0_i32_1 = arith.constant 0 : i32
    return %c0_i32, %c0_i32_0 : i32, i32
  }
  func.func @transform_5(%arg0: i32, %arg1: i32, %arg2: i32) -> (i32, i32) {
    %c0_i32 = arith.constant 0 : i32
    %c0_i32_0 = arith.constant 0 : i32
    %c0_i32_1 = arith.constant 0 : i32
    return %c0_i32, %c0_i32_0 : i32, i32
  }
  func.func @transform_6(%arg0: i32, %arg1: i32, %arg2: i32) -> (i32, i32, i32) {
    %c0_i32 = arith.constant 0 : i32
    %c0_i32_0 = arith.constant 0 : i32
    return %arg0, %c0_i32, %arg1 : i32, i32, i32
  }
}

</mosaic_0001>

<bundles_post_ra>
// kernel: self_attention_pallas.1
= control target key start
LH: loop header
LB: loop body
LE: loop exit
PB: predicated region body
PF: predicated region fallthrough
CT: control target
= control target key end

     0   :  { %s1934_s23 = smov 0   ;;  %s1936_s24 = smov 0   ;;  %s2719_s0 = inlined_call_operand.vmem [shape: bf16[2,40,256], index: 0, kind: input, shape index: {}]   ;;  %s2720_s1 = inlined_call_operand.vmem [shape: f32[2,32,256], index: 1, kind: input, shape index: {}]   ;;  %s2721_s2 = inlined_call_operand.vmem [shape: bf16[2,256,40], index: 2, kind: input, shape index: {}]   ;;  %s2722_s3 = inlined_call_operand.vmem [shape: bf16[2,32,256], index: 3, kind: input, shape index: {}]   ;;  %s2723_s4 = inlined_call_operand.vmem [shape: f32[32,1], index: 4, kind: input, shape index: {}]   ;;  %s2724_s5 = inlined_call_operand.<no memory space> [shape: f32[1,1], index: 5, kind: input, shape index: {}]   ;;  %s2725_s6 = inlined_call_operand.vmem [shape: f32[2,32,256], index: 6, kind: output, shape index: {}]  }
   0x1   :  { %11 = sst [smem:[#allocation5]] %s2724_s5  ;;  %s1938_s25 = smov 0  }
   0x2 LB: > { %s36_s5 = sadd.s32 1, %s1886_s24  ;;  %p1616_p0 = scmp.ge.s32.totalorder %s1890_s25, 1  ;;  %s1890_s25 = sphi %s1938_s25, %s17_s25   ;;  %s1886_s24 = sphi %s1936_s24, %s2868_s24   ;;  %s1882_s23 = sphi %s1934_s23, %s2867_s23  }
   0x3   : > { %p38_p1 = scmp.ge.s32.totalorder %s36_s5, 2  ;;  %p292_p2 = scmp.lt.s32.totalorder %s1890_s25, 3 }
   0x5   : > { %s2870_s5 = smov (%p38_p1, %s36_s5), 0  ;;  %p293_p3 = pnand %p1616_p0, %p292_p2 }
   0x7   : > { %296 = sbr.rel (%p293_p3) target bundleno = 713 (0x2c9), region = 44 }
   0xc   : > { %p358_p4 = scmp.lt.s32.totalorder %s1882_s23, 1  ;;  %v1892_v0 = vmov 0   ;;  %vm617_vm0 = vcmask 1043456   ;;  %vm568_vm1 = vcmask 326656   ;;  %v2726_v31 = vlaneseq  ;;  %s1434_s22 = sld [smem:[#allocation5]] }
   0xd   : > { %656 = vmatprep.mubr.bf16.mxu0 %v1892_v0  ;;  %1704 = vset.pattern.permute.xlu0 %v1892_v0  ;;  %v2776_v33 = vmov 0  ;;  %v1893_v34 = vmov -1e+30   ;;  %v1894_v35 = vmov 0.0  }
   0xe   : > { %s2872_s23 = smov (!%p358_p4, %s1882_s23), 1  ;;  %1705 = vset.pattern.permute.xlu1 %v1892_v0  ;;  %vm2029_vm2 = vcmp.lt.s32.totalorder %v2726_v31, 256 }
   0xf   : > { %s1675_s26 = smul.u32 40, %s2872_s23  ;;  %s1672_s27 = sshll.u32 %s2872_s23, 7  ;;  %v2777_v33 = vsel %vm2029_vm2, 4294967295, %v2776_v33  ;;  %416 = vst.msk [vmem:[#allocation2] sm:$0x3] %vm2029_vm2, %v1893_v34 }
  0x10   : > { %s1962_s30 = scalar_lea.vmem %s2721_s2, %s1672_s27  ;;  %2778 = vst [vmem:[#allocation6_spill] sm:$0xff] %v2777_v33  ;;  %417 = vst.msk [vmem:[#allocation3] sm:$0x3] %vm2029_vm2, %v1894_v35  ;;  %s1673_s10 = sshll.u32 %s2872_s23, 5 }
  0x11   : > { %s365_s9 = scalar_lea.vmem %s2719_s0, %s1675_s26  ;;  %v1714_v9 = vld [vmem:[%s1962_s30] sm:$0xff]   ;;  %v1715_v10 = vld [vmem:[%s1962_s30 + $0x8] sm:$0xff]   ;;  %v1716_v11 = vld [vmem:[%s1962_s30 + $0x10] sm:$0xff]   ;;  %s2234_s13 = scalar_lea.vmem %s2722_s3, %s1673_s10 }
  0x12   : > { %v462_v1 = vld [vmem:[%s365_s9 + $0x20] sm:$0xff]  ;;  %v1708_v4 = vld [vmem:[%s365_s9 + $0x14] ss:$8 sps:$4 sm:$0xff]   ;;  %v1710_v6 = vld [vmem:[%s365_s9 + $0x10] ss:$8 sps:$4 sm:$0xff]   ;;  %s1671_s26 = sshll.u32 %s2872_s23, 6 }
  0x13   : > { %v1647_v2 = vcombine.high %v462_v1, %v462_v1  ;;  %v1646_v3 = vcombine.low %v462_v1, %v462_v1  ;;  %v1711_v7 = vld [vmem:[%s365_s9 + $0x4] ss:$8 sps:$4 sm:$0xff]   ;;  %v1713_v8 = vld [vmem:[%s365_s9] ss:$8 sps:$4 sm:$0xff]   ;;  %v1717_v12 = vld [vmem:[%s1962_s30 + $0x18] sm:$0xff]   ;;  %s2687_s29 = scalar_lea.vmem %s2720_s1, %s1671_s26  ;;  %s2693_s7 = scalar_lea.vmem %s2725_s6, %s1671_s26 }
  0x14   : > { %v1718_v13 = vld [vmem:[%s1962_s30 + $0x20] sm:$0xff]   ;;  %v1719_v14 = vld [vmem:[%s1962_s30 + $0x28] sm:$0xff]   ;;  %v1720_v15 = vld [vmem:[%s1962_s30 + $0x30] sm:$0xff]  }
  0x15   : > { %1648 = vmatprep.subr.msk.bf16.mxu0 %vm617_vm0, %v1647_v2  ;;  %v619_v5 = vsel %vm617_vm0, %v1646_v3, 0  ;;  %v1721_v16 = vld [vmem:[%s1962_s30 + $0x38] sm:$0xff]   ;;  %v1722_v17 = vld [vmem:[%s1962_s30 + $0x40] sm:$0xff]   ;;  %v1723_v18 = vld [vmem:[%s1962_s30 + $0x48] sm:$0xff]  }
  0x16   : > { %635 = vmatpush1.bf16.msra.mxu0 %v619_v5  ;;  %v1724_v19 = vld [vmem:[%s1962_s30 + $0x50] sm:$0xff]   ;;  %v1725_v20 = vld [vmem:[%s1962_s30 + $0x58] sm:$0xff]   ;;  %v1726_v21 = vld [vmem:[%s1962_s30 + $0x60] sm:$0xff]  }
  0x17   : > { %636 = vmatprep.subr.bf16.mxu0 %v1708_v4  ;;  %v1727_v22 = vld [vmem:[%s1962_s30 + $0x68] sm:$0xff]   ;;  %v1728_v23 = vld [vmem:[%s1962_s30 + $0x70] sm:$0xff]   ;;  %v1729_v24 = vld [vmem:[%s1962_s30 + $0x78] sm:$0xff]  }
  0x1a   : > { %637 = vmatpush1.bf16.msra.mxu0 %v1710_v6 }
  0x1b   : > { %638 = vmatprep.subr.bf16.mxu0 %v1711_v7 }
  0x1e   : > { %639 = vmatpush1.bf16.msra.mxu0 %v1713_v8 }
  0x21   : > { %1649 = vmatmul.mubr.msk.bf16.vlgmr.msra.gmra.mxu0 %vm568_vm1, %v1714_v9 }
  0x22   : > { %666 = vmatprep.mubr.bf16.mxu0 %v1892_v0 }
  0x29   : > { %1650 = vmatmul.mubr.msk.bf16.gmra.mxu0 %vm568_vm1, %v1715_v10 }
  0x2a   : > { %676 = vmatprep.mubr.bf16.mxu0 %v1892_v0 }
  0x31   : > { %1651 = vmatmul.mubr.msk.bf16.gmra.mxu0 %vm568_vm1, %v1716_v11 }
  0x32   : > { %686 = vmatprep.mubr.bf16.mxu0 %v1892_v0 }
  0x39   : > { %1652 = vmatmul.mubr.msk.bf16.gmra.mxu0 %vm568_vm1, %v1717_v12 }
  0x3a   : > { %696 = vmatprep.mubr.bf16.mxu0 %v1892_v0 }
  0x41   : > { %1653 = vmatmul.mubr.msk.bf16.gmra.mxu0 %vm568_vm1, %v1718_v13 }
  0x42   : > { %706 = vmatprep.mubr.bf16.mxu0 %v1892_v0 }
  0x49   : > { %1654 = vmatmul.mubr.msk.bf16.gmra.mxu0 %vm568_vm1, %v1719_v14 }
  0x4a   : > { %716 = vmatprep.mubr.bf16.mxu0 %v1892_v0 }
  0x51   : > { %1655 = vmatmul.mubr.msk.bf16.gmra.mxu0 %vm568_vm1, %v1720_v15 }
  0x52   : > { %726 = vmatprep.mubr.bf16.mxu0 %v1892_v0 }
  0x59   : > { %1656 = vmatmul.mubr.msk.bf16.gmra.mxu0 %vm568_vm1, %v1721_v16 }
  0x5a   : > { %736 = vmatprep.mubr.bf16.mxu0 %v1892_v0 }
  0x61   : > { %1657 = vmatmul.mubr.msk.bf16.gmra.mxu0 %vm568_vm1, %v1722_v17 }
  0x62   : > { %746 = vmatprep.mubr.bf16.mxu0 %v1892_v0 }
  0x69   : > { %1658 = vmatmul.mubr.msk.bf16.gmra.mxu0 %vm568_vm1, %v1723_v18 }
  0x6a   : > { %756 = vmatprep.mubr.bf16.mxu0 %v1892_v0 }
  0x71   : > { %1659 = vmatmul.mubr.msk.bf16.gmra.mxu0 %vm568_vm1, %v1724_v19 }
  0x72   : > { %766 = vmatprep.mubr.bf16.mxu0 %v1892_v0 }
  0x79   : > { %1660 = vmatmul.mubr.msk.bf16.gmra.mxu0 %vm568_vm1, %v1725_v20 }
  0x7a   : > { %776 = vmatprep.mubr.bf16.mxu0 %v1892_v0 }
  0x81   : > { %1661 = vmatmul.mubr.msk.bf16.gmra.mxu0 %vm568_vm1, %v1726_v21 }
  0x82   : > { %786 = vmatprep.mubr.bf16.mxu0 %v1892_v0 }
  0x89   : > { %1662 = vmatmul.mubr.msk.bf16.gmra.mxu0 %vm568_vm1, %v1727_v22 }
  0x8a   : > { %796 = vmatprep.mubr.bf16.mxu0 %v1892_v0 }
  0x91   : > { %1663 = vmatmul.mubr.msk.bf16.gmra.mxu0 %vm568_vm1, %v1728_v23 }
  0x92   : > { %806 = vmatprep.mubr.bf16.mxu0 %v1892_v0 }
  0x99   : > { %1664 = vmatmul.mubr.msk.bf16.gmra.mxu0 %vm568_vm1, %v1729_v24 }
  0xe1   : > { %v2014_v25 = vpop.f32.mrf.mxu0 }
  0xe3   : > { %v2016_v26 = vpop.f32.mrf.mxu0 }
  0xe5   : > { %v2018_v27 = vpop.f32.mrf.mxu0 }
  0xe7   : > { %v2020_v28 = vpop.f32.mrf.mxu0 }
  0xe9   : > { %v2022_v29 = vpop.f32.mrf.mxu0 }
  0xea   : > { %v818_v14 = vmax.f32 %v2014_v25, %v2022_v29 }
  0xeb   : > { %v2024_v30 = vpop.f32.mrf.mxu0 }
  0xec   : > { %v855_v17 = vmax.f32 %v2016_v26, %v2024_v30 }
  0xed   : > { %v2026_v32 = vpop.f32.mrf.mxu0 }
  0xee   : > { %v819_v15 = vmax.f32 %v2018_v27, %v2026_v32 }
  0xef   : > { %v2037_v36 = vpop.f32.mrf.mxu0 }
  0xf0   : > { %2779 = vst [vmem:[#allocation7_spill] sm:$0xff] %v2037_v36  ;;  %v856_v18 = vmax.f32 %v2020_v28, %v2037_v36 }
  0xf1   : > { %v2039_v37 = vpop.f32.mrf.mxu0 }
  0xf2   : > { %v820_v19 = vmax.f32 %v818_v14, %v2039_v37 }
  0xf3   : > { %v2041_v38 = vpop.f32.mrf.mxu0 }
  0xf4   : > { %v857_v22 = vmax.f32 %v855_v17, %v2041_v38 }
  0xf5   : > { %v2043_v39 = vpop.f32.mrf.mxu0 }
  0xf6   : > { %2780 = vst [vmem:[#allocation8_spill] sm:$0xff] %v2043_v39  ;;  %v821_v20 = vmax.f32 %v819_v15, %v2043_v39 }
  0xf7   : > { %v2045_v40 = vpop.f32.mrf.mxu0 }
  0xf8   : > { %v858_v23 = vmax.f32 %v856_v18, %v2045_v40 }
  0xf9   : > { %v2047_v41 = vpop.f32.mrf.mxu0 }
  0xfa   : > { %v822_v24 = vmax.f32 %v820_v19, %v2047_v41 }
  0xfb   : > { %v2049_v42 = vpop.f32.mrf.mxu0 }
  0xfc   : > { %v859_v31 = vmax.f32 %v857_v22, %v2049_v42 }
  0xfd   : > { %v2051_v43 = vpop.f32.mrf.mxu0 }
  0xfe   : > { %2781 = vst [vmem:[#allocation9_spill] sm:$0xff] %v2051_v43  ;;  %v823_v34 = vmax.f32 %v821_v20, %v2051_v43 }
  0xff   : > { %v2053_v44 = vpop.f32.mrf.mxu0 }
 0x100   : > { %v860_v36 = vmax.f32 %v858_v23, %v2053_v44 }
 0x101   : > { %v2055_v45 = vpop.f32.mrf.mxu0 }
 0x102   : > { %v824_v14 = vmax.f32 %v822_v24, %v2055_v45 }
 0x103   : > { %v2057_v46 = vpop.f32.mrf.mxu0 }
 0x104   : > { %v861_v17 = vmax.f32 %v859_v31, %v2057_v46 }
 0x105   : > { %v2059_v47 = vpop.f32.mrf.mxu0 }
 0x106   : > { %2782 = vst [vmem:[#allocation10_spill] sm:$0xff] %v2059_v47  ;;  %v825_v15 = vmax.f32 %v823_v34, %v2059_v47 }
 0x107   : > { %v2061_v48 = vpop.f32.mrf.mxu0 }
 0x108   : > { %v862_v18 = vmax.f32 %v860_v36, %v2061_v48 }
 0x109   : > { %v2063_v49 = vpop.f32.mrf.mxu0 }
 0x10a   : > { %v826_v19 = vmax.f32 %v824_v14, %v2063_v49 }
 0x10b   : > { %v2065_v50 = vpop.f32.mrf.mxu0 }
 0x10c   : > { %v863_v22 = vmax.f32 %v861_v17, %v2065_v50 }
 0x10d   : > { %v2067_v51 = vpop.f32.mrf.mxu0 }
 0x10e   : > { %2783 = vst [vmem:[#allocation11_spill] sm:$0xff] %v2067_v51  ;;  %v827_v20 = vmax.f32 %v825_v15, %v2067_v51 }
 0x10f   : > { %v2069_v52 = vpop.f32.mrf.mxu0 }
 0x110   : > { %v864_v23 = vmax.f32 %v862_v18, %v2069_v52 }
 0x111   : > { %v2071_v53 = vpop.f32.mrf.mxu0 }
 0x112   : > { %v828_v24 = vmax.f32 %v826_v19, %v2071_v53 }
 0x113   : > { %v2073_v54 = vpop.f32.mrf.mxu0 }
 0x114   : > { %v865_v31 = vmax.f32 %v863_v22, %v2073_v54 }
 0x115   : > { %v2075_v55 = vpop.f32.mrf.mxu0 }
 0x116   : > { %2784 = vst [vmem:[#allocation12_spill] sm:$0xff] %v2075_v55  ;;  %v829_v34 = vmax.f32 %v827_v20, %v2075_v55 }
 0x117   : > { %v2077_v56 = vpop.f32.mrf.mxu0 }
 0x118   : > { %v866_v36 = vmax.f32 %v864_v23, %v2077_v56 }
 0x119   : > { %v2079_v57 = vpop.f32.mrf.mxu0 }
 0x11a   : > { %v830_v14 = vmax.f32 %v828_v24, %v2079_v57 }
 0x11b   : > { %v2081_v58 = vpop.f32.mrf.mxu0 }
 0x11c   : > { %v867_v17 = vmax.f32 %v865_v31, %v2081_v58 }
 0x11d   : > { %v2083_v59 = vpop.f32.mrf.mxu0 }
 0x11e   : > { %2785 = vst [vmem:[#allocation13_spill] sm:$0xff] %v2083_v59  ;;  %v831_v15 = vmax.f32 %v829_v34, %v2083_v59 }
 0x11f   : > { %v2085_v60 = vpop.f32.mrf.mxu0 }
 0x120   : > { %v868_v18 = vmax.f32 %v866_v36, %v2085_v60 }
 0x121   : > { %v2087_v61 = vpop.f32.mrf.mxu0 }
 0x122   : > { %v832_v19 = vmax.f32 %v830_v14, %v2087_v61 }
 0x123   : > { %v2089_v62 = vpop.f32.mrf.mxu0 }
 0x124   : > { %v869_v22 = vmax.f32 %v867_v17, %v2089_v62 }
 0x125   : > { %v2091_v63 = vpop.f32.mrf.mxu0 }
 0x126   : > { %2786 = vst [vmem:[#allocation14_spill] sm:$0xff] %v2091_v63  ;;  %v833_v20 = vmax.f32 %v831_v15, %v2091_v63 }
 0x127   : > { %v2093_v0 = vpop.f32.mrf.mxu0 }
 0x128   : > { %v870_v23 = vmax.f32 %v868_v18, %v2093_v0 }
 0x129   : > { %v2095_v1 = vpop.f32.mrf.mxu0 }
 0x12a   : > { %v834_v24 = vmax.f32 %v832_v19, %v2095_v1 }
 0x12b   : > { %v2097_v2 = vpop.f32.mrf.mxu0 }
 0x12c   : > { %v871_v31 = vmax.f32 %v869_v22, %v2097_v2 }
 0x12d   : > { %v2099_v3 = vpop.f32.mrf.mxu0 }
 0x12e   : > { %2787 = vst [vmem:[#allocation15_spill] sm:$0xff] %v2099_v3  ;;  %v835_v34 = vmax.f32 %v833_v20, %v2099_v3 }
 0x12f   : > { %v2101_v4 = vpop.f32.mrf.mxu0 }
 0x130   : > { %v872_v36 = vmax.f32 %v870_v23, %v2101_v4 }
 0x131   : > { %v2103_v5 = vpop.f32.mrf.mxu0 }
 0x132   : > { %v836_v14 = vmax.f32 %v834_v24, %v2103_v5 }
 0x133   : > { %v2105_v6 = vpop.f32.mrf.mxu0 }
 0x134   : > { %v873_v17 = vmax.f32 %v871_v31, %v2105_v6 }
 0x135   : > { %v2107_v7 = vpop.f32.mrf.mxu0 }
 0x136   : > { %2788 = vst [vmem:[#allocation16_spill] sm:$0xff] %v2107_v7  ;;  %v837_v15 = vmax.f32 %v835_v34, %v2107_v7 }
 0x137   : > { %v2109_v8 = vpop.f32.mrf.mxu0 }
 0x138   : > { %v874_v18 = vmax.f32 %v872_v36, %v2109_v8 }
 0x139   : > { %v2111_v9 = vpop.f32.mrf.mxu0 }
 0x13a   : > { %v838_v19 = vmax.f32 %v836_v14, %v2111_v9 }
 0x13b   : > { %v2113_v10 = vpop.f32.mrf.mxu0 }
 0x13c   : > { %v875_v22 = vmax.f32 %v873_v17, %v2113_v10 }
 0x13d   : > { %v2115_v11 = vpop.f32.mrf.mxu0 }
 0x13e   : > { %2789 = vst [vmem:[#allocation17_spill] sm:$0xff] %v2115_v11  ;;  %v839_v20 = vmax.f32 %v837_v15, %v2115_v11 }
 0x13f   : > { %v2117_v12 = vpop.f32.mrf.mxu0 }
 0x140   : > { %v876_v23 = vmax.f32 %v874_v18, %v2117_v12 }
 0x141   : > { %v2119_v13 = vpop.f32.mrf.mxu0 }
 0x142   : > { %v840_v24 = vmax.f32 %v838_v19, %v2119_v13 }
 0x143   : > { %v2125_v16 = vpop.f32.mrf.mxu0 }
 0x144   : > { %v877_v31 = vmax.f32 %v875_v22, %v2125_v16 }
 0x145   : > { %v2133_v21 = vpop.f32.mrf.mxu0 }
 0x146   : > { %2790 = vst [vmem:[#allocation18_spill] sm:$0xff] %v2133_v21  ;;  %v841_v34 = vmax.f32 %v839_v20, %v2133_v21 }
 0x147   : > { %v2139_v35 = vpop.f32.mrf.mxu0 }
 0x148   : > { %2791 = vst [vmem:[#allocation19_spill] sm:$0xff] %v2139_v35  ;;  %v878_v36 = vmax.f32 %v876_v23, %v2139_v35 }
 0x149   : > { %v2145_v39 = vpop.f32.mrf.mxu0 }
 0x14a   : > { %2792 = vst [vmem:[#allocation20_spill] sm:$0xff] %v2145_v39  ;;  %v842_v14 = vmax.f32 %v840_v24, %v2145_v39 }
 0x14b   : > { %v2151_v43 = vpop.f32.mrf.mxu0 }
 0x14c   : > { %2793 = vst [vmem:[#allocation21_spill] sm:$0xff] %v2151_v43  ;;  %v879_v17 = vmax.f32 %v877_v31, %v2151_v43 }
 0x14d   : > { %v2157_v47 = vpop.f32.mrf.mxu0 }
 0x14e   : > { %2794 = vst [vmem:[#allocation22_spill] sm:$0xff] %v2157_v47  ;;  %v843_v15 = vmax.f32 %v841_v34, %v2157_v47 }
 0x14f   : > { %v2163_v51 = vpop.f32.mrf.mxu0 }
 0x150   : > { %2795 = vst [vmem:[#allocation23_spill] sm:$0xff] %v2163_v51  ;;  %v880_v18 = vmax.f32 %v878_v36, %v2163_v51 }
 0x151   : > { %v2169_v55 = vpop.f32.mrf.mxu0 }
 0x152   : > { %2796 = vst [vmem:[#allocation24_spill] sm:$0xff] %v2169_v55  ;;  %v844_v19 = vmax.f32 %v842_v14, %v2169_v55 }
 0x153   : > { %v2175_v59 = vpop.f32.mrf.mxu0 }
 0x154   : > { %2797 = vst [vmem:[#allocation25_spill] sm:$0xff] %v2175_v59  ;;  %v881_v22 = vmax.f32 %v879_v17, %v2175_v59  ;;  %v1895_v17 = vmov 1966171168  }
 0x155   : > { %v2181_v63 = vpop.f32.mrf.mxu0  ;;  %v896_v59 = vunpack.c.l.s4 %v1895_v17 }
 0x156   : > { %2798 = vst [vmem:[#allocation26_spill] sm:$0xff] %v2181_v63  ;;  %v845_v20 = vmax.f32 %v843_v15, %v2181_v63 }
 0x157   : > { %v2187_v3 = vpop.f32.mrf.mxu0 }
 0x158   : > { %2799 = vst [vmem:[#allocation27_spill] sm:$0xff] %v2187_v3  ;;  %v882_v23 = vmax.f32 %v880_v18, %v2187_v3 }
 0x159   : > { %v2193_v7 = vpop.f32.mrf.mxu0 }
 0x15a   : > { %2800 = vst [vmem:[#allocation28_spill] sm:$0xff] %v2193_v7  ;;  %v846_v24 = vmax.f32 %v844_v19, %v2193_v7  ;;  %v2802_v7 = vlaneseq }
 0x15b   : > { %v2199_v11 = vpop.f32.mrf.mxu0 }
 0x15c   : > { %v883_v31 = vmax.f32 %v881_v22, %v2199_v11  ;;  %v899_v35 = vshrl.u32 %v2802_v7, 7 }
 0x15d   : > { %v2205_v21 = vpop.f32.mrf.mxu0 }
 0x15e   : > { %2801 = vst [vmem:[#allocation29_spill] sm:$0xff] %v2205_v21  ;;  %v847_v34 = vmax.f32 %v845_v20, %v2205_v21  ;;  %v897_v21 = vunpack.c.0.s8 %v896_v59  ;;  %v1732_v59 = vld [vmem:[%s2234_s13 + $0x4] ss:$8 sps:$4 sm:$0xff]  }
 0x15f   : > { %v2211_v47 = vpop.f32.mrf.mxu0  ;;  %1332 = vmatprep.mubr.bf16.mxu1 %v1732_v59 }
 0x160   : > { %v848_v43 = vmax.f32 %v846_v24, %v847_v34  ;;  %v884_v36 = vmax.f32 %v882_v23, %v2211_v47  ;;  %v2216_v23 = vsub.s32 %v897_v21, %v899_v35 }
 0x162   : > { %v849_v14 = vrot.slane %v848_v43, 4  ;;  %v885_v55 = vmax.f32 %v883_v31, %v884_v36  ;;  %2803 = vst [vmem:[#allocation30_spill] sm:$0xff] %v2216_v23  ;;  %v2219_v36 = vld [vmem:[#allocation2] sm:$0x3] }
 0x163   : > { %2804 = vst [vmem:[#allocation31_spill] sm:$0xff] %v2219_v36 }
 0x164   : > { %v850_v15 = vmax.f32 %v848_v43, %v849_v14  ;;  %v886_v63 = vrot.slane %v885_v55, 4  ;;  %v1402_v14 = vld [vmem:[%s2723_s4] sm:$0xff] }
 0x165   : > { %1408 = vperm.xlu0 %1704, %v1402_v14  }
 0x166   : > { %v851_v51 = vrot.slane %v850_v15, 2  ;;  %v887_v39 = vmax.f32 %v885_v55, %v886_v63  ;;  %v2237_v63 = vsub.s32 0, %v899_v35 }
 0x168   : > { %v852_v18 = vmax.f32 %v850_v15, %v851_v51  ;;  %v888_v3 = vrot.slane %v887_v39, 2  ;;  %2806 = vst [vmem:[#allocation33_spill] sm:$0xff] %v2237_v63  ;;  %v1404_v15 = vld [vmem:[%s2723_s4 + $0x10] sm:$0xff] }
 0x169   : > { %1418 = vperm.xlu1 %1705, %v1404_v15   ;;  %v2809_v15 = vld [vmem:[#allocation8_spill] sm:$0xff] }
 0x16a   : > { %v853_v19 = vrot.slane %v852_v18, 1  ;;  %v889_v20 = vmax.f32 %v887_v39, %v888_v3  ;;  %v2239_v3 = vsub.s32 1, %v899_v35  ;;  %v1403_v35 = vld [vmem:[%s2723_s4 + $0x8] sm:$0xff] }
 0x16b   : > { %1413 = vperm.xlu0 %1704, %v1403_v35  }
 0x16c   : > { %v890_v22 = vrot.slane %v889_v20, 1  ;;  %v854_v24 = vmax.f32 %v852_v18, %v853_v19  ;;  %2807 = vst [vmem:[#allocation34_spill] sm:$0xff] %v2239_v3  ;;  %v1405_v19 = vld [vmem:[%s2723_s4 + $0x18] sm:$0xff] }
 0x16d   : > { %1423 = vperm.xlu1 %1705, %v1405_v19  }
 0x16e   : > { %v891_v34 = vmax.f32 %v889_v20, %v890_v22 }
 0x170   : > { %v894_v31 = vcombine.low %v854_v24, %v891_v34 }
 0x172   : > { %v901_v43 = vrot.slane %v894_v31, %v2216_v23 }
 0x174   : > { %v908_v55 = vrot.slane %v901_v43, %v2216_v23  ;;  %v2808_v43 = vld [vmem:[#allocation7_spill] sm:$0xff] }
 0x176   : > { %v2223_v51 = vmax.f32 %v2219_v36, %v908_v55 }
 0x178   : > { %2805 = vst [vmem:[#allocation32_spill] sm:$0xff] %v2223_v51  ;;  %1369 = vst.msk [vmem:[#allocation2] sm:$0x3] %vm2029_vm2, %v2223_v51  ;;  %v2243_v7 = vrot.slane %v2223_v51, %v2237_v63  ;;  %v2247_v21 = vrot.slane %v2223_v51, %v2239_v3 }
 0x17a   : > { %v925_v17 = vsub.f32 %v2014_v25, %v2243_v7  ;;  %v926_v18 = vsub.f32 %v2016_v26, %v2247_v21  ;;  %v927_v20 = vsub.f32 %v2018_v27, %v2243_v7  ;;  %v928_v22 = vsub.f32 %v2020_v28, %v2247_v21 }
 0x17b   : > { %v929_v24 = vsub.f32 %v2022_v29, %v2243_v7  ;;  %v930_v25 = vsub.f32 %v2024_v30, %v2247_v21  ;;  %v931_v26 = vsub.f32 %v2026_v32, %v2243_v7  ;;  %v932_v55 = vsub.f32 %v2808_v43, %v2247_v21 }
 0x17c   : > { %v989_v34 = vmul.f32 1.442695, %v925_v17  ;;  %v991_v31 = vmul.f32 1.442695, %v926_v18  ;;  %v993_v27 = vmul.f32 1.442695, %v927_v20  ;;  %v933_v28 = vsub.f32 %v2039_v37, %v2243_v7 }
 0x17d   : > { %v995_v59 = vmul.f32 1.442695, %v928_v22  ;;  %v997_v29 = vmul.f32 1.442695, %v929_v24  ;;  %v934_v14 = vsub.f32 %v2041_v38, %v2247_v21  ;;  %v999_v30 = vmul.f32 1.442695, %v930_v25 }
 0x17e   : > { %1736 = vpow2.f32 %v989_v34  ;;  %v935_v32 = vsub.f32 %v2809_v15, %v2243_v7  ;;  %v1001_v35 = vmul.f32 1.442695, %v931_v26  ;;  %v936_v17 = vsub.f32 %v2045_v40, %v2247_v21  ;;  %v2810_v22 = vld [vmem:[#allocation9_spill] sm:$0xff] }
 0x17f   : > { %1738 = vpow2.f32 %v991_v31  ;;  %v1003_v18 = vmul.f32 1.442695, %v932_v55  ;;  %v937_v37 = vsub.f32 %v2047_v41, %v2243_v7  ;;  %v1005_v19 = vmul.f32 1.442695, %v933_v28  ;;  %v2811_v31 = vld [vmem:[#allocation10_spill] sm:$0xff] }
 0x180   : > { %1740 = vpow2.f32 %v993_v27  ;;  %v938_v38 = vsub.f32 %v2049_v42, %v2247_v21  ;;  %v1007_v20 = vmul.f32 1.442695, %v934_v14  ;;  %v939_v24 = vsub.f32 %v2810_v22, %v2243_v7 }
 0x181   : > { %1742 = vpow2.f32 %v995_v59  ;;  %v1009_v25 = vmul.f32 1.442695, %v935_v32  ;;  %v940_v40 = vsub.f32 %v2053_v44, %v2247_v21  ;;  %v1011_v26 = vmul.f32 1.442695, %v936_v17 }
 0x182   : > { %1744 = vpow2.f32 %v997_v29  ;;  %v941_v41 = vsub.f32 %v2055_v45, %v2243_v7  ;;  %v942_v34 = vsub.f32 %v2057_v46, %v2247_v21  ;;  %v1013_v42 = vmul.f32 1.442695, %v937_v37  ;;  %v2812_v46 = vld [vmem:[#allocation11_spill] sm:$0xff] }
 0x183   : > { %1746 = vpow2.f32 %v999_v30  ;;  %v943_v43 = vsub.f32 %v2811_v31, %v2243_v7  ;;  %v944_v55 = vsub.f32 %v2061_v48, %v2247_v21  ;;  %v1015_v27 = vmul.f32 1.442695, %v938_v38 }
 0x184   : > { %1748 = vpow2.f32 %v1001_v35  ;;  %v945_v44 = vsub.f32 %v2063_v49, %v2243_v7  ;;  %v946_v59 = vsub.f32 %v2065_v50, %v2247_v21  ;;  %v1017_v45 = vmul.f32 1.442695, %v939_v24  ;;  %v2814_v50 = vld [vmem:[#allocation12_spill] sm:$0xff] }
 0x185   : > { %1750 = vpow2.f32 %v1003_v18  ;;  %v947_v28 = vsub.f32 %v2812_v46, %v2243_v7  ;;  %v948_v29 = vsub.f32 %v2069_v52, %v2247_v21  ;;  %v1019_v14 = vmul.f32 1.442695, %v940_v40  ;;  %v2817_v40 = vld [vmem:[#allocation14_spill] sm:$0xff] }
 0x186   : > { %1752 = vpow2.f32 %v1005_v19  ;;  %v949_v48 = vsub.f32 %v2071_v53, %v2243_v7  ;;  %v950_v30 = vsub.f32 %v2073_v54, %v2247_v21  ;;  %v1021_v49 = vmul.f32 1.442695, %v941_v41  ;;  %v2816_v19 = vld [vmem:[#allocation13_spill] sm:$0xff] }
 0x187   : > { %1754 = vpow2.f32 %v1007_v20  ;;  %v951_v32 = vsub.f32 %v2814_v50, %v2243_v7  ;;  %v952_v35 = vsub.f32 %v2077_v56, %v2247_v21  ;;  %v1023_v52 = vmul.f32 1.442695, %v942_v34 }
 0x188   : > { %1756 = vpow2.f32 %v1009_v25  ;;  %v953_v53 = vsub.f32 %v2079_v57, %v2243_v7  ;;  %v954_v54 = vsub.f32 %v2081_v58, %v2247_v21  ;;  %v1025_v18 = vmul.f32 1.442695, %v943_v43 }
 0x189   : > { %1758 = vpow2.f32 %v1011_v26  ;;  %v955_v38 = vsub.f32 %v2816_v19, %v2243_v7  ;;  %v956_v56 = vsub.f32 %v2085_v60, %v2247_v21  ;;  %v1027_v20 = vmul.f32 1.442695, %v944_v55  ;;  %v2818_v55 = vld [vmem:[#allocation15_spill] sm:$0xff] }
 0x18a   : > { %1760 = vpow2.f32 %v1013_v42  ;;  %v957_v57 = vsub.f32 %v2087_v61, %v2243_v7  ;;  %v958_v58 = vsub.f32 %v2089_v62, %v2247_v21  ;;  %v1029_v24 = vmul.f32 1.442695, %v945_v44 }
 0x18b   : > { %v2313_v15 = vpop.eup %1736  ;;  %1762 = vpow2.f32 %v1015_v27  ;;  %v959_v26 = vsub.f32 %v2817_v40, %v2243_v7  ;;  %v960_v60 = vsub.f32 %v2093_v0, %v2247_v21  ;;  %v1031_v41 = vmul.f32 1.442695, %v946_v59 }
 0x18c   : > { %2813 = vst [vmem:[#allocation7_spill] sm:$0xff] %v2313_v15  ;;  %v2319_v17 = vpop.eup %1738  ;;  %1764 = vpow2.f32 %v1017_v45  ;;  %v961_v61 = vsub.f32 %v2095_v1, %v2243_v7  ;;  %v962_v42 = vsub.f32 %v2097_v2, %v2247_v21  ;;  %v1033_v31 = vmul.f32 1.442695, %v947_v28 }
 0x18d   : > { %v2325_v37 = vpop.eup %1740  ;;  %1766 = vpow2.f32 %v1019_v14  ;;  %v1035_v44 = vmul.f32 1.442695, %v948_v29  ;;  %v1037_v46 = vmul.f32 1.442695, %v949_v48  ;;  %v1039_v50 = vmul.f32 1.442695, %v950_v30 }
 0x18e   : > { %2815 = vst [vmem:[#allocation8_spill] sm:$0xff] %v2325_v37  ;;  %v2331_v22 = vpop.eup %1742  ;;  %1768 = vpow2.f32 %v1021_v49  ;;  %v1119_v59 = vadd.f32 %v2325_v37, %v2313_v15  ;;  %v1041_v19 = vmul.f32 1.442695, %v951_v32  ;;  %v1043_v30 = vmul.f32 1.442695, %v952_v35 }
 0x18f   : > { %v2337_v25 = vpop.eup %1744  ;;  %1770 = vpow2.f32 %v1023_v52  ;;  %v1156_v14 = vadd.f32 %v2331_v22, %v2319_v17  ;;  %v1045_v28 = vmul.f32 1.442695, %v953_v53  ;;  %v1049_v29 = vmul.f32 1.442695, %v955_v38 }
 0x190   : > { %v2343_v34 = vpop.eup %1746  ;;  %1772 = vpow2.f32 %v1025_v18  ;;  %v1120_v52 = vadd.f32 %v2337_v25, %v1119_v59  ;;  %v1051_v48 = vmul.f32 1.442695, %v956_v56  ;;  %v1055_v56 = vmul.f32 1.442695, %v958_v58 }
 0x191   : > { %v2349_v43 = vpop.eup %1748  ;;  %1774 = vpow2.f32 %v1027_v20  ;;  %v1157_v20 = vadd.f32 %v2343_v34, %v1156_v14  ;;  %v2819_v14 = vld [vmem:[#allocation16_spill] sm:$0xff]  ;;  %v1059_v58 = vmul.f32 1.442695, %v960_v60  ;;  %v1063_v60 = vmul.f32 1.442695, %v962_v42 }
 0x192   : > { %v2355_v45 = vpop.eup %1750  ;;  %1776 = vpow2.f32 %v1029_v24  ;;  %v1121_v59 = vadd.f32 %v2349_v43, %v1120_v52  ;;  %v1053_v52 = vmul.f32 1.442695, %v957_v57  ;;  %v1057_v57 = vmul.f32 1.442695, %v959_v26 }
 0x193   : > { %v2361_v49 = vpop.eup %1752  ;;  %1778 = vpow2.f32 %v1031_v41  ;;  %v1158_v32 = vadd.f32 %v2355_v45, %v1157_v20  ;;  %v1047_v41 = vmul.f32 1.442695, %v954_v54  ;;  %v1061_v26 = vmul.f32 1.442695, %v961_v61 }
 0x194   : > { %v2366_v18 = vpop.eup %1754  ;;  %1780 = vpow2.f32 %v1033_v31  ;;  %v1122_v35 = vadd.f32 %v2361_v49, %v1121_v59  ;;  %v2823_v61 = vsub.f32 %v2818_v55, %v2243_v7  ;;  %v2825_v42 = vsub.f32 %v2101_v4, %v2247_v21  ;;  %v2840_v4 = vld [vmem:[#allocation28_spill] sm:$0xff] }
 0x195   : > { %v2371_v24 = vpop.eup %1756  ;;  %1782 = vpow2.f32 %v1035_v44  ;;  %v1159_v53 = vadd.f32 %v2366_v18, %v1158_v32  ;;  %v2820_v32 = vld [vmem:[#allocation17_spill] sm:$0xff] }
 0x196   : > { %v2376_v39 = vpop.eup %1758  ;;  %1784 = vpow2.f32 %v1037_v46  ;;  %v1123_v54 = vadd.f32 %v2371_v24, %v1122_v35 }
 0x197   : > { %v2381_v31 = vpop.eup %1760  ;;  %1786 = vpow2.f32 %v1039_v50  ;;  %v1160_v38 = vadd.f32 %v2376_v39, %v1159_v53 }
 0x198   : > { %v2386_v44 = vpop.eup %1762  ;;  %1788 = vpow2.f32 %v1041_v19 }
 0x199   : > { %v2391_v46 = vpop.eup %1764  ;;  %1790 = vpow2.f32 %v1043_v30  ;;  %v1124_v30 = vadd.f32 %v2381_v31, %v1123_v54  ;;  %v1161_v53 = vadd.f32 %v2386_v44, %v1160_v38 }
 0x19a   : > { %v2396_v50 = vpop.eup %1766  ;;  %1792 = vpow2.f32 %v1045_v28 }
 0x19b   : > { %v2401_v19 = vpop.eup %1768  ;;  %1794 = vpow2.f32 %v1047_v41  ;;  %v1125_v41 = vadd.f32 %v2391_v46, %v1124_v30 }
 0x19c   : > { %v2409_v35 = vpop.eup %1770  ;;  %1796 = vpow2.f32 %v1049_v29  ;;  %v1162_v29 = vadd.f32 %v2396_v50, %v1161_v53  ;;  %v1065_v53 = vmul.f32 1.442695, %v2823_v61 }
 0x19d   : > { %v2417_v27 = vpop.eup %1772  ;;  %1798 = vpow2.f32 %v1051_v48  ;;  %v2821_v48 = vld [vmem:[#allocation18_spill] sm:$0xff]  ;;  %v1126_v30 = vadd.f32 %v2401_v19, %v1125_v41  ;;  %v1067_v41 = vmul.f32 1.442695, %v2825_v42 }
 0x19e   : > { %v2425_v54 = vpop.eup %1774  ;;  %1800 = vpow2.f32 %v1053_v52  ;;  %v2822_v52 = vld [vmem:[#allocation19_spill] sm:$0xff]  ;;  %v1163_v62 = vadd.f32 %v2409_v35, %v1162_v29  ;;  %v2827_v29 = vsub.f32 %v2103_v5, %v2243_v7  ;;  %v2831_v5 = vsub.f32 %v2819_v14, %v2243_v7 }
 0x19f   : > { %v2433_v38 = vpop.eup %1776  ;;  %1802 = vpow2.f32 %v1055_v56  ;;  %v2824_v56 = vld [vmem:[#allocation20_spill] sm:$0xff]  ;;  %v1127_v28 = vadd.f32 %v2417_v27, %v1126_v30  ;;  %v2829_v30 = vsub.f32 %v2105_v6, %v2247_v21  ;;  %v2833_v6 = vsub.f32 %v2109_v8, %v2247_v21 }
 0x1a0   : > { %v2441_v40 = vpop.eup %1778  ;;  %1804 = vpow2.f32 %v1057_v57  ;;  %v2826_v57 = vld [vmem:[#allocation21_spill] sm:$0xff]  ;;  %v1069_v61 = vmul.f32 1.442695, %v2827_v29  ;;  %v1164_v59 = vadd.f32 %v2425_v54, %v1163_v62  ;;  %v1073_v62 = vmul.f32 1.442695, %v2831_v5 }
 0x1a1   : > { %v2449_v0 = vpop.eup %1780  ;;  %1806 = vpow2.f32 %v1059_v58  ;;  %v2828_v58 = vld [vmem:[#allocation22_spill] sm:$0xff]  ;;  %v1071_v42 = vmul.f32 1.442695, %v2829_v30  ;;  %v1128_v20 = vadd.f32 %v2433_v38, %v1127_v28  ;;  %v1075_v28 = vmul.f32 1.442695, %v2833_v6 }
 0x1a2   : > { %v2457_v1 = vpop.eup %1782  ;;  %1808 = vpow2.f32 %v1061_v26  ;;  %v2830_v26 = vld [vmem:[#allocation23_spill] sm:$0xff]  ;;  %v1165_v29 = vadd.f32 %v2441_v40, %v1164_v59  ;;  %v2835_v14 = vsub.f32 %v2111_v9, %v2243_v7  ;;  %v2837_v8 = vsub.f32 %v2113_v10, %v2247_v21 }
 0x1a3   : > { %v2465_v2 = vpop.eup %1784  ;;  %1810 = vpow2.f32 %v1063_v60  ;;  %v2832_v60 = vld [vmem:[#allocation24_spill] sm:$0xff]  ;;  %v1129_v30 = vadd.f32 %v2449_v0, %v1128_v20  ;;  %v2839_v9 = vsub.f32 %v2820_v32, %v2243_v7  ;;  %v2841_v10 = vsub.f32 %v2117_v12, %v2247_v21 }
 0x1a4   : > { %v1787_v55 = vpop.eup %1786  ;;  %1812 = vpow2.f32 %v1065_v53  ;;  %v2834_v53 = vld [vmem:[#allocation25_spill] sm:$0xff]  ;;  %v1077_v59 = vmul.f32 1.442695, %v2835_v14  ;;  %v1166_v5 = vadd.f32 %v2457_v1, %v1165_v29  ;;  %v1079_v20 = vmul.f32 1.442695, %v2837_v8 }
 0x1a5   : > { %v2479_v63 = vpop.eup %1788  ;;  %1814 = vpow2.f32 %v1067_v41  ;;  %v2836_v41 = vld [vmem:[#allocation26_spill] sm:$0xff]  ;;  %v1130_v6 = vadd.f32 %v2465_v2, %v1129_v30  ;;  %v1081_v29 = vmul.f32 1.442695, %v2839_v9  ;;  %v1083_v8 = vmul.f32 1.442695, %v2841_v10 }
 0x1a6   : > { %v1791_v3 = vpop.eup %1790  ;;  %1816 = vpow2.f32 %v1069_v61  ;;  %v2838_v61 = vld [vmem:[#allocation27_spill] sm:$0xff]  ;;  %v1167_v14 = vadd.f32 %v1787_v55, %v1166_v5 }
 0x1a7   : > { %v1793_v23 = vpop.eup %1792  ;;  %1818 = vpow2.f32 %v1071_v42  ;;  %v1131_v30 = vadd.f32 %v2479_v63, %v1130_v6 }
 0x1a8   : > { %v1795_v51 = vpop.eup %1794  ;;  %1820 = vpow2.f32 %v1073_v62  ;;  %v2842_v62 = vsub.f32 %v2119_v13, %v2243_v7  ;;  %v1168_v32 = vadd.f32 %v1791_v3, %v1167_v14  ;;  %v2844_v13 = vsub.f32 %v2821_v48, %v2243_v7 }
 0x1a9   : > { %v1797_v36 = vpop.eup %1796  ;;  %1822 = vpow2.f32 %v1075_v28  ;;  %v2843_v28 = vsub.f32 %v2125_v16, %v2247_v21  ;;  %v1132_v37 = vadd.f32 %v1793_v23, %v1131_v30  ;;  %v2845_v16 = vsub.f32 %v2822_v52, %v2247_v21 }
 0x1aa   : > { %v1799_v15 = vpop.eup %1798  ;;  %1824 = vpow2.f32 %v1077_v59  ;;  %v1085_v33 = vmul.f32 1.442695, %v2842_v62  ;;  %v1262_v9 = vpack.c.bf16 %v1797_v36, %v1793_v23  ;;  %v986_v59 = vsub.f32 %v2199_v11, %v2247_v21 }
 0x1ab   : > { %v2513_v5 = vpop.eup %1800  ;;  %1826 = vpow2.f32 %v1079_v20  ;;  %v1087_v42 = vmul.f32 1.442695, %v2843_v28  ;;  %v1263_v12 = vpack.c.bf16 %v1799_v15, %v1795_v51  ;;  %v1089_v6 = vmul.f32 1.442695, %v2844_v13 }
 0x1ac   : > { %v2518_v10 = vpop.eup %1802  ;;  %1828 = vpow2.f32 %v1081_v29  ;;  %v1169_v14 = vadd.f32 %v1795_v51, %v1168_v32  ;;  %v1091_v20 = vmul.f32 1.442695, %v2845_v16  ;;  %v1133_v23 = vadd.f32 %v1797_v36, %v1132_v37 }
 0x1ad   : > { %v2525_v62 = vpop.eup %1804  ;;  %1830 = vpow2.f32 %v1083_v8  ;;  %1300 = vmatprep.subr.bf16.mxu1 %v1263_v12  ;;  %v1261_v30 = vpack.c.bf16 %v1791_v3, %v1787_v55  ;;  %v2846_v11 = vsub.f32 %v2824_v56, %v2243_v7  ;;  %v2847_v36 = vsub.f32 %v2826_v57, %v2247_v21 }
 0x1ae   : > { %v2530_v28 = vpop.eup %1806  ;;  %1832 = vpow2.f32 %v1085_v33  ;;  %v1170_v48 = vadd.f32 %v1799_v15, %v1169_v14  ;;  %1301 = vmatpush1.bf16.msra.mxu1 %v1262_v9  ;;  %v1264_v51 = vpack.c.bf16 %v2525_v62, %v2513_v5  ;;  %v1134_v3 = vadd.f32 %v2513_v5, %v1133_v23 }
 0x1af   : > { %v1093_v29 = vmul.f32 1.442695, %v2846_v11  ;;  %v2537_v8 = vpop.eup %1808  ;;  %1834 = vpow2.f32 %v1087_v42  ;;  %v1095_v37 = vmul.f32 1.442695, %v2847_v36  ;;  %1302 = vmatprep.subr.bf16.mxu1 %v1261_v30  ;;  %v1265_v33 = vpack.c.bf16 %v2530_v28, %v2518_v10 }
 0x1b0   : > { %v2545_v52 = vpop.eup %1810  ;;  %1836 = vpow2.f32 %v1089_v6  ;;  %v2848_v15 = vsub.f32 %v2828_v58, %v2243_v7  ;;  %v1171_v55 = vadd.f32 %v2518_v10, %v1170_v48  ;;  %v1260_v42 = vpack.c.bf16 %v2479_v63, %v2465_v2  ;;  %v2850_v58 = vld [vmem:[#allocation29_spill] sm:$0xff] }
 0x1b1   : > { %v2553_v57 = vpop.eup %1812  ;;  %1838 = vpow2.f32 %v1091_v20  ;;  %v2849_v32 = vsub.f32 %v2830_v26, %v2247_v21  ;;  %v1135_v12 = vadd.f32 %v2525_v62, %v1134_v3  ;;  %v1259_v13 = vpack.c.bf16 %v2457_v1, %v2441_v40 }
 0x1b2   : > { %v1097_v56 = vmul.f32 1.442695, %v2848_v15  ;;  %v2561_v6 = vpop.eup %1814  ;;  %v987_v14 = vsub.f32 %v2850_v58, %v2243_v7  ;;  %1840 = vpow2.f32 %v1093_v29  ;;  %v2851_v63 = vsub.f32 %v2832_v60, %v2243_v7  ;;  %1303 = vmatpush1.bf16.msra.mxu1 %v1260_v42 }
 0x1b3   : > { %v1099_v9 = vmul.f32 1.442695, %v2849_v32  ;;  %v1172_v16 = vadd.f32 %v2530_v28, %v1171_v55  ;;  %v2569_v26 = vpop.eup %1816  ;;  %v988_v20 = vsub.f32 %v2211_v47, %v2247_v21  ;;  %1842 = vpow2.f32 %v1095_v37  ;;  %1304 = vmatprep.subr.bf16.mxu1 %v1259_v13 }
 0x1b4   : > { %v1101_v2 = vmul.f32 1.442695, %v2851_v63  ;;  %v2852_v40 = vsub.f32 %v2834_v53, %v2247_v21  ;;  %v1136_v23 = vadd.f32 %v2537_v8, %v1135_v12  ;;  %v2577_v30 = vpop.eup %1818  ;;  %1844 = vpow2.f32 %v1097_v56 }
 0x1b5   : > { %v2853_v60 = vsub.f32 %v2836_v41, %v2243_v7  ;;  %v1173_v29 = vadd.f32 %v2545_v52, %v1172_v16  ;;  %v1258_v47 = vpack.c.bf16 %v2449_v0, %v2433_v38  ;;  %v2585_v48 = vpop.eup %1820  ;;  %1846 = vpow2.f32 %v1099_v9 }
 0x1b6   : > { %v1103_v1 = vmul.f32 1.442695, %v2852_v40  ;;  %v2854_v53 = vsub.f32 %v2838_v61, %v2247_v21  ;;  %v1137_v37 = vadd.f32 %v2553_v57, %v1136_v23  ;;  %v1257_v3 = vpack.c.bf16 %v2425_v54, %v2409_v35  ;;  %v2593_v15 = vpop.eup %1822 }
 0x1b7   : > { %v1105_v11 = vmul.f32 1.442695, %v2853_v60  ;;  %1848 = vpow2.f32 %v1101_v2  ;;  %v2855_v41 = vsub.f32 %v2840_v4, %v2243_v7  ;;  %v1174_v38 = vadd.f32 %v2561_v6, %v1173_v29  ;;  %1305 = vmatpush1.bf16.msra.mxu1 %v1258_v47  ;;  %v2599_v0 = vpop.eup %1824 }
 0x1b8   : > { %v1107_v36 = vmul.f32 1.442695, %v2854_v53  ;;  %1850 = vpow2.f32 %v1103_v1  ;;  %v1111_v21 = vmul.f32 1.442695, %v986_v59  ;;  %v1138_v61 = vadd.f32 %v2569_v26, %v1137_v37  ;;  %1306 = vmatprep.subr.bf16.mxu1 %v1257_v3  ;;  %v2602_v55 = vpop.eup %1826 }
 0x1b9   : > { %v1109_v56 = vmul.f32 1.442695, %v2855_v41  ;;  %1852 = vpow2.f32 %v1105_v11  ;;  %v1113_v35 = vmul.f32 1.442695, %v987_v14  ;;  %v1175_v54 = vadd.f32 %v2577_v30, %v1174_v38  ;;  %v2607_v4 = vpop.eup %1828 }
 0x1ba   : > { %v1256_v7 = vpack.c.bf16 %v2417_v27, %v2401_v19  ;;  %1854 = vpow2.f32 %v1107_v36  ;;  %v1115_v42 = vmul.f32 1.442695, %v988_v20  ;;  %v1139_v32 = vadd.f32 %v2585_v48, %v1138_v61  ;;  %v2612_v9 = vpop.eup %1830 }
 0x1bb   : > { %v1255_v59 = vpack.c.bf16 %v2396_v50, %v2386_v44  ;;  %1856 = vpow2.f32 %v1109_v56  ;;  %v1176_v12 = vadd.f32 %v2593_v15, %v1175_v54  ;;  %v2615_v13 = vpop.eup %1832  ;;  %v1254_v44 = vpack.c.bf16 %v2391_v46, %v2381_v31 }
 0x1bc   : > { %1307 = vmatpush1.bf16.msra.mxu1 %v1256_v7  ;;  %1858 = vpow2.f32 %v1111_v21  ;;  %v1140_v27 = vadd.f32 %v2599_v0, %v1139_v32  ;;  %v2618_v19 = vpop.eup %1834  ;;  %v1253_v63 = vpack.c.bf16 %v2376_v39, %v2366_v18  ;;  %v1252_v46 = vpack.c.bf16 %v2371_v24, %v2361_v49 }
 0x1bd   : > { %1308 = vmatprep.subr.bf16.mxu1 %v1255_v59  ;;  %1860 = vpow2.f32 %v1113_v35  ;;  %v1177_v58 = vadd.f32 %v2602_v55, %v1176_v12  ;;  %v2623_v50 = vpop.eup %1836  ;;  %v1251_v39 = vpack.c.bf16 %v2355_v45, %v2343_v34  ;;  %v1250_v49 = vpack.c.bf16 %v2349_v43, %v2337_v25  ;;  %v2857_v25 = vld [vmem:[#allocation8_spill] sm:$0xff]  ;;  %v2858_v43 = vld [vmem:[#allocation7_spill] sm:$0xff] }
 0x1be   : > { %1862 = vpow2.f32 %v1115_v42  ;;  %v1141_v14 = vadd.f32 %v2607_v4, %v1140_v27  ;;  %v2628_v2 = vpop.eup %1838  ;;  %v2856_v61 = vpack.c.bf16 %v2331_v22, %v2319_v17  ;;  %v2859_v27 = vpack.c.bf16 %v2857_v25, %v2858_v43 }
 0x1bf   : > { %v1178_v16 = vadd.f32 %v2612_v9, %v1177_v58  ;;  %v1841_v20 = vpop.eup %1840 }
 0x1c0   : > { %1309 = vmatpush1.bf16.msra.mxu1 %v1254_v44  ;;  %v1142_v40 = vadd.f32 %v2615_v13, %v1141_v14  ;;  %v1843_v1 = vpop.eup %1842 }
 0x1c1   : > { %1310 = vmatprep.subr.bf16.mxu1 %v1253_v63  ;;  %v1179_v31 = vadd.f32 %v2618_v19, %v1178_v16  ;;  %v1845_v23 = vpop.eup %1844  ;;  %v2860_v63 = vld [vmem:[#allocation31_spill] sm:$0xff]  ;;  %v2861_v16 = vld [vmem:[#allocation32_spill] sm:$0xff] }
 0x1c2   : > { %v1143_v60 = vadd.f32 %v2623_v50, %v1142_v40  ;;  %v1847_v18 = vpop.eup %1846  ;;  %v1274_v29 = vpack.c.bf16 %v1845_v23, %v1841_v20 }
 0x1c3   : > { %v1180_v11 = vadd.f32 %v2628_v2, %v1179_v31  ;;  %v1275_v36 = vpack.c.bf16 %v1847_v18, %v1843_v1 }
 0x1c4   : > { %1311 = vmatpush1.bf16.msra.mxu1 %v1252_v46  ;;  %v1849_v47 = vpop.eup %1848  ;;  %v1144_v53 = vadd.f32 %v1841_v20, %v1143_v60  ;;  %v2862_v20 = vsub.f32 %v2860_v63, %v2861_v16 }
 0x1c5   : > { %1312 = vmatprep.subr.bf16.mxu1 %v1251_v39  ;;  %v1851_v37 = vpop.eup %1850  ;;  %v1181_v3 = vadd.f32 %v1843_v1, %v1180_v11 }
 0x1c6   : > { %v1853_v24 = vpop.eup %1852  ;;  %v1145_v41 = vadd.f32 %v1845_v23, %v1144_v53  ;;  %v912_v40 = vmul.f32 1.442695, %v2862_v20 }
 0x1c7   : > { %v1855_v56 = vpop.eup %1854  ;;  %v1182_v38 = vadd.f32 %v1847_v18, %v1181_v3  ;;  %v1276_v34 = vpack.c.bf16 %v1853_v24, %v1849_v47 }
 0x1c8   : > { %1313 = vmatpush1.bf16.msra.mxu1 %v1250_v49  ;;  %v1857_v45 = vpop.eup %1856  ;;  %v1146_v21 = vadd.f32 %v1849_v47, %v1145_v41  ;;  %v1277_v35 = vpack.c.bf16 %v1855_v56, %v1851_v37  ;;  %1864 = vpow2.f32 %v912_v40  ;;  %v1273_v47 = vpack.c.bf16 %v2628_v2, %v2618_v19  ;;  %v1117_v2 = vld [vmem:[#allocation3] sm:$0x3]  ;;  %v1445_v40 = vld [vmem:[%s2687_s29 + $0x8] sm:$0xff] }
 0x1c9   : > { %1314 = vmatprep.subr.bf16.mxu1 %v2856_v61  ;;  %v1859_v54 = vpop.eup %1858  ;;  %v1183_v7 = vadd.f32 %v1851_v37, %v1182_v38  ;;  %v1272_v49 = vpack.c.bf16 %v2623_v50, %v2615_v13  ;;  %v1271_v41 = vpack.c.bf16 %v2612_v9, %v2602_v55  ;;  %v1270_v38 = vpack.c.bf16 %v2607_v4, %v2599_v0 }
 0x1ca   : > { %v1861_v42 = vpop.eup %1860  ;;  %v1147_v32 = vadd.f32 %v1853_v24, %v1146_v21  ;;  %v1268_v9 = vpack.c.bf16 %v2585_v48, %v2569_v26  ;;  %v1267_v0 = vpack.c.bf16 %v2561_v6, %v2545_v52  ;;  %v1733_v52 = vld [vmem:[%s2234_s13 + $0x14] ss:$8 sps:$4 sm:$0xff]   ;;  %v1735_v6 = vld [vmem:[%s2234_s13 + $0x10] ss:$8 sps:$4 sm:$0xff]  }
 0x1cb   : > { %v1863_v59 = vpop.eup %1862  ;;  %v1184_v12 = vadd.f32 %v1855_v56, %v1183_v7  ;;  %v1278_v58 = vpack.c.bf16 %v1861_v42, %v1857_v45  ;;  %v2865_v48 = vld [vmem:[#allocation33_spill] sm:$0xff] }
 0x1cc   : > { %1315 = vmatpush1.bf16.msra.mxu1 %v2859_v27  ;;  %v1148_v44 = vadd.f32 %v1857_v45, %v1147_v32  ;;  %v1279_v14 = vpack.c.bf16 %v1863_v59, %v1859_v54  ;;  %v1435_v32 = vstv %s1434_s22  ;;  %v1444_v27 = vld [vmem:[%s2687_s29] sm:$0xff] }
 0x1cd   : > { %v1185_v17 = vadd.f32 %v1859_v54, %v1184_v12 }
 0x1ce   : > { %v1149_v22 = vadd.f32 %v1861_v42, %v1148_v44  ;;  %1316 = vmatprep.subr.bf16.mxu1 %v1279_v14 }
 0x1cf   : > { %v1186_v1 = vadd.f32 %v1863_v59, %v1185_v17 }
 0x1d0   : > { %1317 = vmatpush2.bf16.msra.mxu1 %v1278_v58  ;;  %v1150_v31 = vrot.slane %v1149_v22, 4 }
 0x1d1   : > { %1318 = vmatprep.subr.bf16.mxu1 %v1277_v35  ;;  %v1187_v46 = vrot.slane %v1186_v1, 4 }
 0x1d2   : > { %v1151_v23 = vadd.f32 %v1150_v31, %v1149_v22 }
 0x1d3   : > { %v1188_v60 = vadd.f32 %v1187_v46, %v1186_v1 }
 0x1d4   : > { %1319 = vmatpush2.bf16.msra.mxu1 %v1276_v34  ;;  %v1152_v39 = vrot.slane %v1151_v23, 2  ;;  %v2863_v34 = vld [vmem:[#allocation30_spill] sm:$0xff] }
 0x1d5   : > { %1320 = vmatprep.subr.bf16.mxu1 %v1275_v36  ;;  %v1189_v18 = vrot.slane %v1188_v60, 2  ;;  %v1865_v19 = vpop.eup %1864 }
 0x1d6   : > { %v1153_v11 = vadd.f32 %v1152_v39, %v1151_v23  ;;  %v1118_v13 = vmul.f32 %v1865_v19, %v1117_v2  ;;  %v1446_v23 = vld [vmem:[%s2687_s29 + $0x10] sm:$0xff] }
 0x1d7   : > { %v1190_v53 = vadd.f32 %v1189_v18, %v1188_v60 }
 0x1d8   : > { %1321 = vmatpush2.bf16.msra.mxu1 %v1274_v29  ;;  %v1154_v37 = vrot.slane %v1153_v11, 1  ;;  %v1269_v29 = vpack.c.bf16 %v2593_v15, %v2577_v30  ;;  %v1266_v30 = vpack.c.bf16 %v2553_v57, %v2537_v8  ;;  %v1730_v15 = vld [vmem:[%s2234_s13] ss:$8 sps:$4 sm:$0xff]   ;;  %v1229_v8 = vrot.slane %v1865_v19, %v2865_v48 }
 0x1d9   : > { %1322 = vmatprep.subr.bf16.mxu1 %v1273_v47  ;;  %v1191_v3 = vrot.slane %v1190_v53, 1  ;;  %v2866_v57 = vld [vmem:[#allocation34_spill] sm:$0xff] }
 0x1da   : > { %v1155_v24 = vadd.f32 %v1154_v37, %v1153_v11  ;;  %v1233_v21 = vrot.slane %v1865_v19, %v2866_v57  ;;  %v1236_v28 = vmul.f32 0.0, %v1229_v8 }
 0x1db   : > { %v1192_v56 = vadd.f32 %v1191_v3, %v1190_v53  ;;  %v1447_v3 = vld [vmem:[%s2687_s29 + $0x18] sm:$0xff] }
 0x1dc   : > { %1323 = vmatpush2.bf16.msra.mxu1 %v1272_v49 }
 0x1dd   : > { %1324 = vmatprep.subr.bf16.mxu1 %v1271_v41  ;;  %v1195_v36 = vcombine.low %v1155_v24, %v1192_v56 }
 0x1df   : > { %v1202_v45 = vrot.slane %v1195_v36, %v2863_v34 }
 0x1e0   : > { %1325 = vmatpush2.bf16.msra.mxu1 %v1270_v38  ;;  %v1409_v61 = vpop.permute.xlu0 %1408 }
 0x1e1   : > { %1326 = vmatprep.subr.bf16.mxu1 %v1269_v29  ;;  %v1209_v55 = vrot.slane %v1202_v45, %v2863_v34  ;;  %v1448_v34 = vld [vmem:[%s2687_s29 + $0x20] sm:$0xff] }
 0x1e3   : > { %v1211_v4 = vadd.f32 %v1209_v55, %v1118_v13 }
 0x1e4   : > { %1327 = vmatpush2.bf16.msra.mxu1 %v1268_v9  ;;  %v1419_v39 = vpop.permute.xlu1 %1418 }
 0x1e5   : > { %1328 = vmatprep.subr.bf16.mxu1 %v1267_v0  ;;  %1216 = vst.msk [vmem:[#allocation3] sm:$0x3] %vm2029_vm2, %v1211_v4  ;;  %v1449_v0 = vld [vmem:[%s2687_s29 + $0x28] sm:$0xff] }
 0x1e6   : > { %v1414_v44 = vpop.permute.xlu0 %1413 }
 0x1e8   : > { %1329 = vmatpush2.bf16.msra.mxu1 %v1266_v30  ;;  %v1424_v4 = vpop.permute.xlu1 %1423 }
 0x1e9   : > { %1330 = vmatprep.subr.bf16.mxu1 %v1265_v33 }
 0x1ec   : > { %1331 = vmatpush2.bf16.msra.mxu1 %v1264_v51  ;;  %v1373_v26 = vld [vmem:[#allocation3] sm:$0x3]  ;;  %v1237_v51 = vmul.f32 0.0, %v1233_v21 }
 0x1ed   : > { %1866 = vrcp.f32 %v1373_v26 }
 0x1ef   : > { %1333 = vmatmul.mubr.bf16.vlgmr.msra.gmra.mxu1 %v1730_v15 }
 0x1f0   : > { %1342 = vmatprep.mubr.bf16.mxu1 %v1733_v52 }
 0x1f7   : > { %1343 = vmatmul.mubr.bf16.gmra.mxu1 %v1735_v6  ;;  %v1450_v6 = vld [vmem:[%s2687_s29 + $0x30] sm:$0xff] }
 0x1fa   : > { %v1867_v10 = vpop.eup %1866 }
 0x1fb   : > { %v1387_v62 = vrot.slane %v1867_v10, %v2865_v48  ;;  %v1391_v42 = vrot.slane %v1867_v10, %v2866_v57  ;;  %v1451_v57 = vld [vmem:[%s2687_s29 + $0x38] sm:$0xff] }
 0x2af   : > { %v1334_v33 = vpop.f32.mrf.mxu1 }
 0x2b0   : > { %v1353_v5 = vadd.f32 %v1334_v33, %v1236_v28 }
 0x2b1   : > { %v1336_v35 = vpop.f32.mrf.mxu1 }
 0x2b2   : > { %v1394_v54 = vmul.f32 %v1387_v62, %v1353_v5  ;;  %v1354_v7 = vadd.f32 %v1336_v35, %v1237_v51 }
 0x2b3   : > { %v1338_v59 = vpop.f32.mrf.mxu1 }
 0x2b4   : > { %v1395_v12 = vmul.f32 %v1391_v42, %v1354_v7  ;;  %v1426_v25 = vadd.f32 %v1409_v61, %v1394_v54  ;;  %v1355_v43 = vadd.f32 %v1338_v59, %v1236_v28 }
 0x2b5   : > { %v1340_v58 = vpop.f32.mrf.mxu1 }
 0x2b6   : > { %v1427_v14 = vadd.f32 %v1409_v61, %v1395_v12  ;;  %v1436_v63 = vmul.f32 %v1435_v32, %v1426_v25  ;;  %v1356_v16 = vadd.f32 %v1340_v58, %v1237_v51  ;;  %v1396_v20 = vmul.f32 %v1387_v62, %v1355_v43 }
 0x2b7   : > { %v1344_v17 = vpop.f32.mrf.mxu1 }
 0x2b8   : > { %v1437_v22 = vmul.f32 %v1435_v32, %v1427_v14  ;;  %v1452_v1 = vadd.f32 %v1444_v27, %v1436_v63  ;;  %v1397_v31 = vmul.f32 %v1391_v42, %v1356_v16  ;;  %v1428_v46 = vadd.f32 %v1414_v44, %v1396_v20 }
 0x2b9   : > { %v1357_v60 = vadd.f32 %v1344_v17, %v1236_v28  ;;  %v1346_v18 = vpop.f32.mrf.mxu1 }
 0x2ba   : > { %v1453_v11 = vadd.f32 %v1445_v40, %v1437_v22  ;;  %1460 = vst [vmem:[%s2693_s7] sm:$0xff] %v1452_v1  ;;  %v1429_v47 = vadd.f32 %v1414_v44, %v1397_v31  ;;  %v1438_v53 = vmul.f32 %v1435_v32, %v1428_v46  ;;  %v1358_v37 = vadd.f32 %v1346_v18, %v1237_v51 }
 0x2bb   : > { %v1398_v49 = vmul.f32 %v1387_v62, %v1357_v60  ;;  %v1348_v24 = vpop.f32.mrf.mxu1 }
 0x2bc   : > { %1461 = vst [vmem:[%s2693_s7 + $0x8] sm:$0xff] %v1453_v11  ;;  %v1439_v41 = vmul.f32 %v1435_v32, %v1429_v47  ;;  %v1454_v56 = vadd.f32 %v1446_v23, %v1438_v53  ;;  %v1399_v36 = vmul.f32 %v1391_v42, %v1358_v37  ;;  %v1359_v38 = vadd.f32 %v1348_v24, %v1236_v28 }
 0x2bd   : > { %v1430_v19 = vadd.f32 %v1419_v39, %v1398_v49  ;;  %v1350_v2 = vpop.f32.mrf.mxu1 }
 0x2be   : > { %v1455_v29 = vadd.f32 %v1447_v3, %v1439_v41  ;;  %1462 = vst [vmem:[%s2693_s7 + $0x10] sm:$0xff] %v1454_v56  ;;  %v1431_v45 = vadd.f32 %v1419_v39, %v1399_v36  ;;  %v1400_v13 = vmul.f32 %v1387_v62, %v1359_v38  ;;  %v1360_v55 = vadd.f32 %v1350_v2, %v1237_v51 }
 0x2bf   : > { %v1440_v9 = vmul.f32 %v1435_v32, %v1430_v19 }
 0x2c0   : > { %1463 = vst [vmem:[%s2693_s7 + $0x18] sm:$0xff] %v1455_v29  ;;  %v1441_v50 = vmul.f32 %v1435_v32, %v1431_v45  ;;  %v1432_v30 = vadd.f32 %v1424_v4, %v1400_v13  ;;  %v1401_v15 = vmul.f32 %v1391_v42, %v1360_v55 }
 0x2c1   : > { %v1456_v52 = vadd.f32 %v1448_v34, %v1440_v9 }
 0x2c2   : > { %v1457_v26 = vadd.f32 %v1449_v0, %v1441_v50  ;;  %v1442_v48 = vmul.f32 %v1435_v32, %v1432_v30  ;;  %v1433_v8 = vadd.f32 %v1424_v4, %v1401_v15 }
 0x2c3   : > { %1464 = vst [vmem:[%s2693_s7 + $0x20] sm:$0xff] %v1456_v52 }
 0x2c4   : > { %1465 = vst [vmem:[%s2693_s7 + $0x28] sm:$0xff] %v1457_v26  ;;  %v1458_v21 = vadd.f32 %v1450_v6, %v1442_v48  ;;  %v1443_v10 = vmul.f32 %v1435_v32, %v1433_v8 }
 0x2c6   : > { %1466 = vst [vmem:[%s2693_s7 + $0x30] sm:$0xff] %v1458_v21  ;;  %v1459_v28 = vadd.f32 %v1451_v57, %v1443_v10 }
 0x2c8   : > { %1467 = vst [vmem:[%s2693_s7 + $0x38] sm:$0xff] %v1459_v28 }
 0x2c9 PF: > { %s17_s25 = sadd.s32 1, %s1890_s25   ;;  %s2867_s23 = smov %s1886_s24 }
 0x2ca   : > { %p14_p5 = scmp.ge.s32.totalorder %s17_s25, 4   ;;  %s2868_s24 = smov %s2870_s5 }
 0x2cc   :  { %16 = sbr.rel (!%p14_p5) target bundleno = 2 (0x2), region = 91 }

</bundles_post_ra>
